<compile_context>
chip_gen: v7x
topology: tpu7x:2x2x1
jax: 0.10.0
libtpu: 0.0.40
codegen_flags: <defaults>
</compile_context>

<pallas_src>
import functools

import jax
import jax.numpy as jnp
from jax.experimental import pallas as pl
from jax.experimental.pallas import tpu as pltpu


def _round_up(x, m):
    return (x + m - 1) // m * m


def _vmem_limit_bytes():
    """~75% of physical VMEM (96 MiB on v5e/v6e, 48 MiB on v7x)."""
    try:
        cap = pltpu.get_tpu_info().vmem_capacity_bytes
    except Exception:
        cap = 64 * 1024 * 1024          # safe on every generation
    return int(cap) * 3 // 4


def _pick_token_tile(n, cap=512):
    """Router token tile: multiple of 16 (bf16 sublane packing), cap 512.
    For n > cap this automatically yields >= 2 blocks (megacore on v7x)."""
    return int(min(cap, _round_up(max(n, 16), 16)))


def _pick_group_tile(n_assign, n_experts, cap=512):
    """Experts token tile: ~expected rows per expert, multiple of 16, cap 512."""
    per = max(16, n_assign // max(n_experts, 1))
    return int(min(cap, _round_up(per, 16)))


# ----------------------------------------------------------------------------
# Router kernel:  Linear(D -> 2D) -> SwiGLU(2D) -> Linear(2D -> E)
# bf16 operands, f32 accumulation, f32 logits out.
# ----------------------------------------------------------------------------
def _router_kernel(x_ref, wr1_ref, br1_ref, w1_ref, b1_ref, w2_ref, b2_ref,
                   w3_ref, b3_ref, wr2_ref, br2_ref, logits_ref):
    x = x_ref[...]                                                     # bf16 (tn, D)
    h = jnp.dot(x, wr1_ref[...], preferred_element_type=jnp.float32) + br1_ref[...]
    hb = h.astype(jnp.bfloat16)
    x1 = jnp.dot(hb, w1_ref[...], preferred_element_type=jnp.float32) + b1_ref[...]
    x2 = jnp.dot(hb, w2_ref[...], preferred_element_type=jnp.float32) + b2_ref[...]
    hid = (x1 * jax.nn.sigmoid(x1) * x2).astype(jnp.bfloat16)          # silu(x1)*x2
    g = jnp.dot(hid, w3_ref[...], preferred_element_type=jnp.float32) + b3_ref[...]
    gb = g.astype(jnp.bfloat16)
    logits_ref[...] = (
        jnp.dot(gb, wr2_ref[...], preferred_element_type=jnp.float32) + br2_ref[...]
    )


def router_forward(x2d_bf16, p, *, tn):
    Np, D = x2d_bf16.shape
    H = p["router_wr1"].shape[1]          # 2*D
    E = p["router_wr2"].shape[1]

    full = lambda shape: pl.BlockSpec(shape, lambda i: tuple(0 for _ in shape))
    return pl.pallas_call(
        _router_kernel,
        out_shape=jax.ShapeDtypeStruct((Np, E), jnp.float32),
        grid_spec=pltpu.PrefetchScalarGridSpec(
            num_scalar_prefetch=0,
            grid=(Np // tn,),
            in_specs=[
                pl.BlockSpec((tn, D), lambda i: (i, 0)),
                full((D, H)), full((1, H)),
                full((H, H)), full((1, H)),
                full((H, H)), full((1, H)),
                full((H, H)), full((1, H)),
                full((H, E)), full((1, E)),
            ],
            out_specs=pl.BlockSpec((tn, E), lambda i: (i, 0)),
        ),
        compiler_params=pltpu.CompilerParams(
            dimension_semantics=("parallel",),
            vmem_limit_bytes=_vmem_limit_bytes()),
    )(x2d_bf16,
      p["router_wr1"], p["router_br1"],
      p["router_w1"], p["router_b1"],
      p["router_w2"], p["router_b2"],
      p["router_w3"], p["router_b3"],
      p["router_wr2"], p["router_br2"])


# ----------------------------------------------------------------------------
# Grouped experts kernel.
# grid = (num_token_blocks,); the gathered-x / output row blocks follow the
# grid index, while every weight block index comes from the scalar-prefetched
# block->expert table.  Consecutive blocks of the same expert therefore reuse
# the VMEM-resident weights (no re-DMA).  Each block belongs to exactly one
# expert (groups are padded to a multiple of the token tile), so the output is
# written once per block — no cross-step accumulation needed.
# ----------------------------------------------------------------------------
def _experts_kernel(be_ref,                            # SMEM (nb,) scalar prefetch
                    x_ref,
                    win_ref, bin_ref,
                    w1_ref, b1_ref, w2_ref, b2_ref, w3_ref, b3_ref,
                    wout_ref, bout_ref,
                    out_ref):
    del be_ref  # only consumed by the index_maps
    x = x_ref[...]                                                     # bf16 (tm, D)
    h = jnp.dot(x, win_ref[0], preferred_element_type=jnp.float32) + bin_ref[0]
    hb = h.astype(jnp.bfloat16)
    x1 = jnp.dot(hb, w1_ref[0], preferred_element_type=jnp.float32) + b1_ref[0]
    x2 = jnp.dot(hb, w2_ref[0], preferred_element_type=jnp.float32) + b2_ref[0]
    hid = (x1 * jax.nn.sigmoid(x1) * x2).astype(jnp.bfloat16)
    h2 = jnp.dot(hid, w3_ref[0], preferred_element_type=jnp.float32) + b3_ref[0]
    hb2 = h2.astype(jnp.bfloat16)
    y = jnp.dot(hb2, wout_ref[0], preferred_element_type=jnp.float32) + bout_ref[0]
    out_ref[...] = y.astype(out_ref.dtype)                             # bf16 out


def experts_forward(x_g, block_expert, p, *, tm):
    S, D = x_g.shape
    E, _, H = p["exp_win"].shape          # H = 4*D
    nb = S // tm

    wspec = lambda shape: pl.BlockSpec(
        (1,) + shape, lambda b, be: (be[b],) + tuple(0 for _ in shape))

    return pl.pallas_call(
        _experts_kernel,
        out_shape=jax.ShapeDtypeStruct((S, D), jnp.bfloat16),
        grid_spec=pltpu.PrefetchScalarGridSpec(
            num_scalar_prefetch=1,
            grid=(nb,),
            in_specs=[
                pl.BlockSpec((tm, D), lambda b, be: (b, 0)),
                wspec((D, H)), wspec((1, H)),
                wspec((H, H)), wspec((1, H)),
                wspec((H, H)), wspec((1, H)),
                wspec((H, H)), wspec((1, H)),
                wspec((H, D)), wspec((1, D)),
            ],
            out_specs=pl.BlockSpec((tm, D), lambda b, be: (b, 0)),
        ),
        compiler_params=pltpu.CompilerParams(
            dimension_semantics=("parallel",),
            vmem_limit_bytes=_vmem_limit_bytes()),
    )(block_expert, x_g,
      p["exp_win"], p["exp_bin"],
      p["exp_w1"], p["exp_b1"],
      p["exp_w2"], p["exp_b2"],
      p["exp_w3"], p["exp_b3"],
      p["exp_wout"], p["exp_bout"])


# ----------------------------------------------------------------------------
# Full MoE forward: router -> softmax/top-k -> token-gather grouped experts
# -> scatter-add combine (mean over experts, binary top-k mask).
# ----------------------------------------------------------------------------
def moe_forward(x, params, n_experts):
    B, T, D = x.shape
    N = B * T
    E = n_experts
    topk = E // 2

    # bf16 at the kernel boundary; all matmuls accumulate in f32 on the MXU.
    pb = {k: v.astype(jnp.bfloat16) for k, v in params.items()}
    x2d = x.reshape(N, D).astype(jnp.bfloat16)

    # ---- router ----
    tn = _pick_token_tile(N)
    Np = _round_up(N, tn)
    x_pad = jnp.zeros((Np, D), jnp.bfloat16).at[:N].set(x2d)
    logits = router_forward(x_pad, pb, tn=tn)[:N]                      # (N, E) f32
    prob = jax.nn.softmax(logits, axis=-1)
    _, expert_id = jax.lax.top_k(prob, topk)                           # (N, topk)

    # ---- group (token, expert) assignments by expert ----
    n_assign = N * topk
    assign_expert = expert_id.reshape(-1)                              # (N*topk,)
    assign_token = jnp.repeat(jnp.arange(N, dtype=jnp.int32), topk)    # (N*topk,)
    order = jnp.argsort(assign_expert)                                 # stable
    sorted_expert = assign_expert[order]
    sorted_token = assign_token[order]

    tm = _pick_group_tile(n_assign, E)
    counts = jnp.bincount(assign_expert, length=E)                     # (E,)
    padded = ((counts + tm - 1) // tm) * tm                            # per-group pad
    # Static upper bound on the padded total (each group adds < tm pad rows).
    S = _round_up(n_assign + E * (tm - 1), tm)
    nb = S // tm

    unpadded_start = jnp.cumsum(counts) - counts                       # exclusive
    padded_start = jnp.cumsum(padded) - padded                         # exclusive
    rank = jnp.arange(n_assign, dtype=jnp.int32) - unpadded_start[sorted_expert]
    pos = (padded_start[sorted_expert] + rank).astype(jnp.int32)       # (N*topk,)

    # Gather token rows into the padded, expert-contiguous layout.
    x_g = jnp.zeros((S, D), jnp.bfloat16).at[pos].set(x2d[sorted_token])

    # block -> expert table (one expert per block; padded group starts are
    # multiples of tm).  Tail blocks beyond the actual padded total do a little
    # wasted compute on zero rows and are never read back.
    bounds = jnp.cumsum(padded)                                        # inclusive
    block_start = jnp.arange(nb, dtype=jnp.int32) * tm
    block_expert = jnp.clip(
        jnp.searchsorted(bounds, block_start, side="right"), 0, E - 1
    ).astype(jnp.int32)

    # ---- grouped expert FFN ----
    y_g = experts_forward(x_g, block_expert, pb, tm=tm)                # (S, D) bf16

    # ---- combine: mean over experts with binary top-k mask ----
    contrib = y_g[pos].astype(jnp.float32) * (1.0 / E)                 # (N*topk, D)
    out2d = jnp.zeros((N, D), jnp.float32).at[sorted_token].add(contrib)
    return out2d.reshape(B, T, D)


# ----------------------------------------------------------------------------
# Deterministic parameter init + precision-mirroring JAX reference.
# ----------------------------------------------------------------------------
def init_params(key, n_embd, n_experts):
    D, Hr, He, E = n_embd, 2 * n_embd, 4 * n_embd, n_experts
    ks = iter(jax.random.split(key, 32))
    w = lambda shape: (0.05 * jax.random.normal(next(ks), shape)).astype(jnp.float32)
    return {
        # router
        "router_wr1": w((D, Hr)),  "router_br1": w((1, Hr)),
        "router_w1":  w((Hr, Hr)), "router_b1":  w((1, Hr)),
        "router_w2":  w((Hr, Hr)), "router_b2":  w((1, Hr)),
        "router_w3":  w((Hr, Hr)), "router_b3":  w((1, Hr)),
        "router_wr2": w((Hr, E)),  "router_br2": w((1, E)),
        # experts, stacked on leading expert axis
        "exp_win":  w((E, D, He)),  "exp_bin":  w((E, 1, He)),
        "exp_w1":   w((E, He, He)), "exp_b1":   w((E, 1, He)),
        "exp_w2":   w((E, He, He)), "exp_b2":   w((E, 1, He)),
        "exp_w3":   w((E, He, He)), "exp_b3":   w((E, 1, He)),
        "exp_wout": w((E, He, D)),  "exp_bout": w((E, 1, D)),
    }


def _lin_ref(x, w, b):
    # mirrors kernel precision: bf16 operands, f32 accumulation, bf16 bias.
    return jnp.dot(x.astype(jnp.bfloat16), w,
                   preferred_element_type=jnp.float32) + b


def _swiglu_ref(h, w1, b1, w2, b2, w3, b3):
    x1 = _lin_ref(h, w1, b1)
    x2 = _lin_ref(h, w2, b2)
    return _lin_ref(x1 * jax.nn.sigmoid(x1) * x2, w3, b3)


def moe_reference(x, params, n_experts):
    B, T, D = x.shape
    p = {k: v.astype(jnp.bfloat16) for k, v in params.items()}
    x2d = x.reshape(-1, D).astype(jnp.bfloat16)

    h = _lin_ref(x2d, p["router_wr1"], p["router_br1"])
    h = _swiglu_ref(h, p["router_w1"], p["router_b1"], p["router_w2"],
                    p["router_b2"], p["router_w3"], p["router_b3"])
    logits = _lin_ref(h, p["router_wr2"], p["router_br2"])
    prob = jax.nn.softmax(logits, axis=-1)
    _, expert_id = jax.lax.top_k(prob, n_experts // 2)
    mask = jax.nn.one_hot(expert_id, n_experts, dtype=jnp.float32).sum(-2)

    acc = jnp.zeros((x2d.shape[0], D), jnp.float32)
    for e in range(n_experts):
        h = _lin_ref(x2d, p["exp_win"][e], p["exp_bin"][e])
        h = _swiglu_ref(h, p["exp_w1"][e], p["exp_b1"][e], p["exp_w2"][e],
                        p["exp_b2"][e], p["exp_w3"][e], p["exp_b3"][e])
        y = _lin_ref(h, p["exp_wout"][e], p["exp_bout"][e]).astype(jnp.bfloat16)
        acc = acc + y.astype(jnp.float32) * mask[:, e:e + 1]
    return (acc / n_experts).reshape(B, T, D)


if __name__ == "__main__":
    n_embd = 32
    n_experts = 4
    B, T = 2, 16          # N = 32 tokens, top-k = 2 -> 64 routed assignments

    key = jax.random.PRNGKey(0)
    k_x, k_p = jax.random.split(key)
    x = jax.random.normal(k_x, (B, T, n_embd), dtype=jnp.float32)
    params = init_params(k_p, n_embd, n_experts)

    out = jax.jit(functools.partial(moe_forward, n_experts=n_experts))(x, params)
    out = jax.block_until_ready(out)

    ref = moe_reference(x, params, n_experts)
    assert out.shape == (B, T, n_embd)
    assert jnp.allclose(out.astype(jnp.float32), ref, atol=2e-2, rtol=2e-2), \
        "mismatch vs reference"
    print("KERNEL_OK")
</pallas_src>

<mosaic_0001>
module attributes {stable_mosaic.version = 11 : i64} {
  func.func private @main(%arg0: i32) attributes {dimension_semantics = [#tpu.dimension_semantics<core_parallel>], iteration_bounds = array<i64: 2>, tpu.core_type = #tpu.core_type<sc_scalar_subcore>, window_params = []} {
    return
  }
}

module attributes {stable_mosaic.version = 11 : i64} {
  func.func private @main(%arg0: i32) attributes {dimension_semantics = [#tpu.dimension_semantics<core_parallel>], iteration_bounds = array<i64: 2>, tpu.core_type = #tpu.core_type<sc_scalar_subcore>, window_params = []} {
    return
  }
}

module attributes {stable_mosaic.version = 11 : i64} {
  func.func @_router_kernel(%arg0: i32, %arg1: memref<32x32xbf16, #tpu.memory_space<vmem>>, %arg2: memref<32x64xbf16, #tpu.memory_space<vmem>>, %arg3: memref<1x64xbf16, #tpu.memory_space<vmem>>, %arg4: memref<64x64xbf16, #tpu.memory_space<vmem>>, %arg5: memref<1x64xbf16, #tpu.memory_space<vmem>>, %arg6: memref<64x64xbf16, #tpu.memory_space<vmem>>, %arg7: memref<1x64xbf16, #tpu.memory_space<vmem>>, %arg8: memref<64x64xbf16, #tpu.memory_space<vmem>>, %arg9: memref<1x64xbf16, #tpu.memory_space<vmem>>, %arg10: memref<64x4xbf16, #tpu.memory_space<vmem>>, %arg11: memref<1x4xbf16, #tpu.memory_space<vmem>>, %arg12: memref<32x4xf32, #tpu.memory_space<vmem>>) attributes {dimension_semantics = [#tpu.dimension_semantics<parallel>], iteration_bounds = array<i64: 1>, scalar_prefetch = 0 : i64, scratch_operands = 0 : i64, tpu.core_type = #tpu.core_type<tc>, window_params = [{transform_indices = @transform_0, window_bounds = array<i64: 32, 32>}, {pipeline_mode = #tpu.pipeline_mode<synchronous>, transform_indices = @transform_1, window_bounds = array<i64: 32, 64>}, {pipeline_mode = #tpu.pipeline_mode<synchronous>, transform_indices = @transform_2, window_bounds = array<i64: 1, 64>}, {pipeline_mode = #tpu.pipeline_mode<synchronous>, transform_indices = @transform_3, window_bounds = array<i64: 64, 64>}, {pipeline_mode = #tpu.pipeline_mode<synchronous>, transform_indices = @transform_4, window_bounds = array<i64: 1, 64>}, {pipeline_mode = #tpu.pipeline_mode<synchronous>, transform_indices = @transform_5, window_bounds = array<i64: 64, 64>}, {pipeline_mode = #tpu.pipeline_mode<synchronous>, transform_indices = @transform_6, window_bounds = array<i64: 1, 64>}, {pipeline_mode = #tpu.pipeline_mode<synchronous>, transform_indices = @transform_7, window_bounds = array<i64: 64, 64>}, {pipeline_mode = #tpu.pipeline_mode<synchronous>, transform_indices = @transform_8, window_bounds = array<i64: 1, 64>}, {pipeline_mode = #tpu.pipeline_mode<synchronous>, transform_indices = @transform_9, window_bounds = array<i64: 64, 4>}, {pipeline_mode = #tpu.pipeline_mode<synchronous>, transform_indices = @transform_10, window_bounds = array<i64: 1, 4>}, {transform_indices = @transform_11, window_bounds = array<i64: 32, 4>}]} {
    %c0 = arith.constant 0 : index
    %c0_0 = arith.constant 0 : index
    %0 = vector.load %arg1[%c0, %c0_0] : memref<32x32xbf16, #tpu.memory_space<vmem>>, vector<32x32xbf16>
    %c0_1 = arith.constant 0 : index
    %c0_2 = arith.constant 0 : index
    %1 = vector.load %arg2[%c0_1, %c0_2] : memref<32x64xbf16, #tpu.memory_space<vmem>>, vector<32x64xbf16>
    %cst = arith.constant dense<0.000000e+00> : vector<32x64xf32>
    %2 = tpu.matmul %0, %1, %cst {dimension_numbers = #tpu.dot_dimension_numbers<[1], [0], [0], [1], [0, 0, 1, 1], [], []>} : vector<32x32xbf16>, vector<32x64xbf16>, vector<32x64xf32> -> vector<32x64xf32>
    %c0_3 = arith.constant 0 : index
    %c0_4 = arith.constant 0 : index
    %3 = vector.load %arg3[%c0_3, %c0_4] : memref<1x64xbf16, #tpu.memory_space<vmem>>, vector<1x64xbf16>
    %4 = arith.extf %3 : vector<1x64xbf16> to vector<1x64xf32>
    %5 = vector.broadcast %4 : vector<1x64xf32> to vector<32x64xf32>
    %6 = arith.addf %2, %5 : vector<32x64xf32>
    %7 = arith.truncf %6 : vector<32x64xf32> to vector<32x64xbf16>
    %c0_5 = arith.constant 0 : index
    %c0_6 = arith.constant 0 : index
    %8 = vector.load %arg4[%c0_5, %c0_6] : memref<64x64xbf16, #tpu.memory_space<vmem>>, vector<64x64xbf16>
    %cst_7 = arith.constant dense<0.000000e+00> : vector<32x64xf32>
    %9 = tpu.matmul %7, %8, %cst_7 {dimension_numbers = #tpu.dot_dimension_numbers<[1], [0], [0], [1], [0, 0, 1, 1], [], []>} : vector<32x64xbf16>, vector<64x64xbf16>, vector<32x64xf32> -> vector<32x64xf32>
    %c0_8 = arith.constant 0 : index
    %c0_9 = arith.constant 0 : index
    %10 = vector.load %arg5[%c0_8, %c0_9] : memref<1x64xbf16, #tpu.memory_space<vmem>>, vector<1x64xbf16>
    %11 = arith.extf %10 : vector<1x64xbf16> to vector<1x64xf32>
    %12 = vector.broadcast %11 : vector<1x64xf32> to vector<32x64xf32>
    %13 = arith.addf %9, %12 : vector<32x64xf32>
    %c0_10 = arith.constant 0 : index
    %c0_11 = arith.constant 0 : index
    %14 = vector.load %arg6[%c0_10, %c0_11] : memref<64x64xbf16, #tpu.memory_space<vmem>>, vector<64x64xbf16>
    %cst_12 = arith.constant dense<0.000000e+00> : vector<32x64xf32>
    %15 = tpu.matmul %7, %14, %cst_12 {dimension_numbers = #tpu.dot_dimension_numbers<[1], [0], [0], [1], [0, 0, 1, 1], [], []>} : vector<32x64xbf16>, vector<64x64xbf16>, vector<32x64xf32> -> vector<32x64xf32>
    %c0_13 = arith.constant 0 : index
    %c0_14 = arith.constant 0 : index
    %16 = vector.load %arg7[%c0_13, %c0_14] : memref<1x64xbf16, #tpu.memory_space<vmem>>, vector<1x64xbf16>
    %17 = arith.extf %16 : vector<1x64xbf16> to vector<1x64xf32>
    %18 = vector.broadcast %17 : vector<1x64xf32> to vector<32x64xf32>
    %19 = arith.addf %15, %18 : vector<32x64xf32>
    %20 = arith.negf %13 : vector<32x64xf32>
    %21 = math.exp %20 : vector<32x64xf32>
    %cst_15 = arith.constant 1.000000e+00 : f32
    %22 = vector.broadcast %cst_15 : f32 to vector<32x64xf32>
    %23 = arith.addf %22, %21 : vector<32x64xf32>
    %24 = arith.divf %22, %23 : vector<32x64xf32>
    %25 = arith.mulf %13, %24 : vector<32x64xf32>
    %26 = arith.mulf %25, %19 : vector<32x64xf32>
    %27 = arith.truncf %26 : vector<32x64xf32> to vector<32x64xbf16>
    %c0_16 = arith.constant 0 : index
    %c0_17 = arith.constant 0 : index
    %28 = vector.load %arg8[%c0_16, %c0_17] : memref<64x64xbf16, #tpu.memory_space<vmem>>, vector<64x64xbf16>
    %cst_18 = arith.constant dense<0.000000e+00> : vector<32x64xf32>
    %29 = tpu.matmul %27, %28, %cst_18 {dimension_numbers = #tpu.dot_dimension_numbers<[1], [0], [0], [1], [0, 0, 1, 1], [], []>} : vector<32x64xbf16>, vector<64x64xbf16>, vector<32x64xf32> -> vector<32x64xf32>
    %c0_19 = arith.constant 0 : index
    %c0_20 = arith.constant 0 : index
    %30 = vector.load %arg9[%c0_19, %c0_20] : memref<1x64xbf16, #tpu.memory_space<vmem>>, vector<1x64xbf16>
    %31 = arith.extf %30 : vector<1x64xbf16> to vector<1x64xf32>
    %32 = vector.broadcast %31 : vector<1x64xf32> to vector<32x64xf32>
    %33 = arith.addf %29, %32 : vector<32x64xf32>
    %34 = arith.truncf %33 : vector<32x64xf32> to vector<32x64xbf16>
    %c0_21 = arith.constant 0 : index
    %c0_22 = arith.constant 0 : index
    %35 = vector.load %arg10[%c0_21, %c0_22] : memref<64x4xbf16, #tpu.memory_space<vmem>>, vector<64x4xbf16>
    %cst_23 = arith.constant dense<0.000000e+00> : vector<32x4xf32>
    %36 = tpu.matmul %34, %35, %cst_23 {dimension_numbers = #tpu.dot_dimension_numbers<[1], [0], [0], [1], [0, 0, 1, 1], [], []>} : vector<32x64xbf16>, vector<64x4xbf16>, vector<32x4xf32> -> vector<32x4xf32>
    %c0_24 = arith.constant 0 : index
    %c0_25 = arith.constant 0 : index
    %37 = vector.load %arg11[%c0_24, %c0_25] : memref<1x4xbf16, #tpu.memory_space<vmem>>, vector<1x4xbf16>
    %38 = arith.extf %37 : vector<1x4xbf16> to vector<1x4xf32>
    %39 = vector.broadcast %38 : vector<1x4xf32> to vector<32x4xf32>
    %40 = arith.addf %36, %39 : vector<32x4xf32>
    %c0_26 = arith.constant 0 : index
    %c0_27 = arith.constant 0 : index
    %41 = vector.load %arg12[%c0_26, %c0_27] : memref<32x4xf32, #tpu.memory_space<vmem>>, vector<32x4xf32>
    tpu.vector_store %arg12[%c0_26, %c0_27], %40 {strides = array<i32>} : memref<32x4xf32, #tpu.memory_space<vmem>>, vector<32x4xf32>,
    return
  }
  func.func @transform_0(%arg0: i32) -> (i32, i32) {
    %c0_i32 = arith.constant 0 : i32
    %c0_i32_0 = arith.constant 0 : i32
    return %arg0, %c0_i32 : i32, i32
  }
  func.func @transform_1(%arg0: i32) -> (i32, i32) {
    %c0_i32 = arith.constant 0 : i32
    %c0_i32_0 = arith.constant 0 : i32
    %c0_i32_1 = arith.constant 0 : i32
    return %c0_i32, %c0_i32_0 : i32, i32
  }
  func.func @transform_2(%arg0: i32) -> (i32, i32) {
    %c0_i32 = arith.constant 0 : i32
    %c0_i32_0 = arith.constant 0 : i32
    %c0_i32_1 = arith.constant 0 : i32
    return %c0_i32, %c0_i32_0 : i32, i32
  }
  func.func @transform_3(%arg0: i32) -> (i32, i32) {
    %c0_i32 = arith.constant 0 : i32
    %c0_i32_0 = arith.constant 0 : i32
    %c0_i32_1 = arith.constant 0 : i32
    return %c0_i32, %c0_i32_0 : i32, i32
  }
  func.func @transform_4(%arg0: i32) -> (i32, i32) {
    %c0_i32 = arith.constant 0 : i32
    %c0_i32_0 = arith.constant 0 : i32
    %c0_i32_1 = arith.constant 0 : i32
    return %c0_i32, %c0_i32_0 : i32, i32
  }
  func.func @transform_5(%arg0: i32) -> (i32, i32) {
    %c0_i32 = arith.constant 0 : i32
    %c0_i32_0 = arith.constant 0 : i32
    %c0_i32_1 = arith.constant 0 : i32
    return %c0_i32, %c0_i32_0 : i32, i32
  }
  func.func @transform_6(%arg0: i32) -> (i32, i32) {
    %c0_i32 = arith.constant 0 : i32
    %c0_i32_0 = arith.constant 0 : i32
    %c0_i32_1 = arith.constant 0 : i32
    return %c0_i32, %c0_i32_0 : i32, i32
  }
  func.func @transform_7(%arg0: i32) -> (i32, i32) {
    %c0_i32 = arith.constant 0 : i32
    %c0_i32_0 = arith.constant 0 : i32
    %c0_i32_1 = arith.constant 0 : i32
    return %c0_i32, %c0_i32_0 : i32, i32
  }
  func.func @transform_8(%arg0: i32) -> (i32, i32) {
    %c0_i32 = arith.constant 0 : i32
    %c0_i32_0 = arith.constant 0 : i32
    %c0_i32_1 = arith.constant 0 : i32
    return %c0_i32, %c0_i32_0 : i32, i32
  }
  func.func @transform_9(%arg0: i32) -> (i32, i32) {
    %c0_i32 = arith.constant 0 : i32
    %c0_i32_0 = arith.constant 0 : i32
    %c0_i32_1 = arith.constant 0 : i32
    return %c0_i32, %c0_i32_0 : i32, i32
  }
  func.func @transform_10(%arg0: i32) -> (i32, i32) {
    %c0_i32 = arith.constant 0 : i32
    %c0_i32_0 = arith.constant 0 : i32
    %c0_i32_1 = arith.constant 0 : i32
    return %c0_i32, %c0_i32_0 : i32, i32
  }
  func.func @transform_11(%arg0: i32) -> (i32, i32) {
    %c0_i32 = arith.constant 0 : i32
    %c0_i32_0 = arith.constant 0 : i32
    return %arg0, %c0_i32 : i32, i32
  }
}

module attributes {stable_mosaic.version = 11 : i64} {
  func.func @_experts_kernel(%arg0: i32, %arg1: memref<8xi32, #tpu.memory_space<smem>>, %arg2: memref<16x32xbf16, #tpu.memory_space<vmem>>, %arg3: memref<1x32x128xbf16, #tpu.memory_space<vmem>>, %arg4: memref<1x1x128xbf16, #tpu.memory_space<vmem>>, %arg5: memref<1x128x128xbf16, #tpu.memory_space<vmem>>, %arg6: memref<1x1x128xbf16, #tpu.memory_space<vmem>>, %arg7: memref<1x128x128xbf16, #tpu.memory_space<vmem>>, %arg8: memref<1x1x128xbf16, #tpu.memory_space<vmem>>, %arg9: memref<1x128x128xbf16, #tpu.memory_space<vmem>>, %arg10: memref<1x1x128xbf16, #tpu.memory_space<vmem>>, %arg11: memref<1x128x32xbf16, #tpu.memory_space<vmem>>, %arg12: memref<1x1x32xbf16, #tpu.memory_space<vmem>>, %arg13: memref<16x32xbf16, #tpu.memory_space<vmem>>) attributes {dimension_semantics = [#tpu.dimension_semantics<parallel>], iteration_bounds = array<i64: 8>, scalar_prefetch = 1 : i64, scratch_operands = 0 : i64, tpu.core_type = #tpu.core_type<tc>, window_params = [{transform_indices = @transform_0, window_bounds = array<i64: 16, 32>}, {transform_indices = @transform_1, window_bounds = array<i64: 1, 32, 128>}, {transform_indices = @transform_2, window_bounds = array<i64: 1, 1, 128>}, {transform_indices = @transform_3, window_bounds = array<i64: 1, 128, 128>}, {transform_indices = @transform_4, window_bounds = array<i64: 1, 1, 128>}, {transform_indices = @transform_5, window_bounds = array<i64: 1, 128, 128>}, {transform_indices = @transform_6, window_bounds = array<i64: 1, 1, 128>}, {transform_indices = @transform_7, window_bounds = array<i64: 1, 128, 128>}, {transform_indices = @transform_8, window_bounds = array<i64: 1, 1, 128>}, {transform_indices = @transform_9, window_bounds = array<i64: 1, 128, 32>}, {transform_indices = @transform_10, window_bounds = array<i64: 1, 1, 32>}, {transform_indices = @transform_11, window_bounds = array<i64: 16, 32>}]} {
    %c0 = arith.constant 0 : index
    %c0_0 = arith.constant 0 : index
    %0 = vector.load %arg2[%c0, %c0_0] : memref<16x32xbf16, #tpu.memory_space<vmem>>, vector<16x32xbf16>
    %c0_1 = arith.constant 0 : index
    %c0_2 = arith.constant 0 : index
    %c0_3 = arith.constant 0 : index
    %1 = vector.load %arg3[%c0_1, %c0_2, %c0_3] : memref<1x32x128xbf16, #tpu.memory_space<vmem>>, vector<1x32x128xbf16>
    %2 = vector.shape_cast %1 : vector<1x32x128xbf16> to vector<32x128xbf16>
    %cst = arith.constant dense<0.000000e+00> : vector<16x128xf32>
    %3 = tpu.matmul %0, %2, %cst {dimension_numbers = #tpu.dot_dimension_numbers<[1], [0], [0], [1], [0, 0, 1, 1], [], []>} : vector<16x32xbf16>, vector<32x128xbf16>, vector<16x128xf32> -> vector<16x128xf32>
    %c0_4 = arith.constant 0 : index
    %c0_5 = arith.constant 0 : index
    %c0_6 = arith.constant 0 : index
    %4 = vector.load %arg4[%c0_4, %c0_5, %c0_6] : memref<1x1x128xbf16, #tpu.memory_space<vmem>>, vector<1x1x128xbf16>
    %5 = vector.shape_cast %4 : vector<1x1x128xbf16> to vector<1x128xbf16>
    %6 = arith.extf %5 : vector<1x128xbf16> to vector<1x128xf32>
    %7 = vector.broadcast %6 : vector<1x128xf32> to vector<16x128xf32>
    %8 = arith.addf %3, %7 : vector<16x128xf32>
    %9 = arith.truncf %8 : vector<16x128xf32> to vector<16x128xbf16>
    %c0_7 = arith.constant 0 : index
    %c0_8 = arith.constant 0 : index
    %c0_9 = arith.constant 0 : index
    %10 = vector.load %arg5[%c0_7, %c0_8, %c0_9] : memref<1x128x128xbf16, #tpu.memory_space<vmem>>, vector<1x128x128xbf16>
    %11 = vector.shape_cast %10 : vector<1x128x128xbf16> to vector<128x128xbf16>
    %cst_10 = arith.constant dense<0.000000e+00> : vector<16x128xf32>
    %12 = tpu.matmul %9, %11, %cst_10 {dimension_numbers = #tpu.dot_dimension_numbers<[1], [0], [0], [1], [0, 0, 1, 1], [], []>} : vector<16x128xbf16>, vector<128x128xbf16>, vector<16x128xf32> -> vector<16x128xf32>
    %c0_11 = arith.constant 0 : index
    %c0_12 = arith.constant 0 : index
    %c0_13 = arith.constant 0 : index
    %13 = vector.load %arg6[%c0_11, %c0_12, %c0_13] : memref<1x1x128xbf16, #tpu.memory_space<vmem>>, vector<1x1x128xbf16>
    %14 = vector.shape_cast %13 : vector<1x1x128xbf16> to vector<1x128xbf16>
    %15 = arith.extf %14 : vector<1x128xbf16> to vector<1x128xf32>
    %16 = vector.broadcast %15 : vector<1x128xf32> to vector<16x128xf32>
    %17 = arith.addf %12, %16 : vector<16x128xf32>
    %c0_14 = arith.constant 0 : index
    %c0_15 = arith.constant 0 : index
    %c0_16 = arith.constant 0 : index
    %18 = vector.load %arg7[%c0_14, %c0_15, %c0_16] : memref<1x128x128xbf16, #tpu.memory_space<vmem>>, vector<1x128x128xbf16>
    %19 = vector.shape_cast %18 : vector<1x128x128xbf16> to vector<128x128xbf16>
    %cst_17 = arith.constant dense<0.000000e+00> : vector<16x128xf32>
    %20 = tpu.matmul %9, %19, %cst_17 {dimension_numbers = #tpu.dot_dimension_numbers<[1], [0], [0], [1], [0, 0, 1, 1], [], []>} : vector<16x128xbf16>, vector<128x128xbf16>, vector<16x128xf32> -> vector<16x128xf32>
    %c0_18 = arith.constant 0 : index
    %c0_19 = arith.constant 0 : index
    %c0_20 = arith.constant 0 : index
    %21 = vector.load %arg8[%c0_18, %c0_19, %c0_20] : memref<1x1x128xbf16, #tpu.memory_space<vmem>>, vector<1x1x128xbf16>
    %22 = vector.shape_cast %21 : vector<1x1x128xbf16> to vector<1x128xbf16>
    %23 = arith.extf %22 : vector<1x128xbf16> to vector<1x128xf32>
    %24 = vector.broadcast %23 : vector<1x128xf32> to vector<16x128xf32>
    %25 = arith.addf %20, %24 : vector<16x128xf32>
    %26 = arith.negf %17 : vector<16x128xf32>
    %27 = math.exp %26 : vector<16x128xf32>
    %cst_21 = arith.constant 1.000000e+00 : f32
    %28 = vector.broadcast %cst_21 : f32 to vector<16x128xf32>
    %29 = arith.addf %28, %27 : vector<16x128xf32>
    %30 = arith.divf %28, %29 : vector<16x128xf32>
    %31 = arith.mulf %17, %30 : vector<16x128xf32>
    %32 = arith.mulf %31, %25 : vector<16x128xf32>
    %33 = arith.truncf %32 : vector<16x128xf32> to vector<16x128xbf16>
    %c0_22 = arith.constant 0 : index
    %c0_23 = arith.constant 0 : index
    %c0_24 = arith.constant 0 : index
    %34 = vector.load %arg9[%c0_22, %c0_23, %c0_24] : memref<1x128x128xbf16, #tpu.memory_space<vmem>>, vector<1x128x128xbf16>
    %35 = vector.shape_cast %34 : vector<1x128x128xbf16> to vector<128x128xbf16>
    %cst_25 = arith.constant dense<0.000000e+00> : vector<16x128xf32>
    %36 = tpu.matmul %33, %35, %cst_25 {dimension_numbers = #tpu.dot_dimension_numbers<[1], [0], [0], [1], [0, 0, 1, 1], [], []>} : vector<16x128xbf16>, vector<128x128xbf16>, vector<16x128xf32> -> vector<16x128xf32>
    %c0_26 = arith.constant 0 : index
    %c0_27 = arith.constant 0 : index
    %c0_28 = arith.constant 0 : index
    %37 = vector.load %arg10[%c0_26, %c0_27, %c0_28] : memref<1x1x128xbf16, #tpu.memory_space<vmem>>, vector<1x1x128xbf16>
    %38 = vector.shape_cast %37 : vector<1x1x128xbf16> to vector<1x128xbf16>
    %39 = arith.extf %38 : vector<1x128xbf16> to vector<1x128xf32>
    %40 = vector.broadcast %39 : vector<1x128xf32> to vector<16x128xf32>
    %41 = arith.addf %36, %40 : vector<16x128xf32>
    %42 = arith.truncf %41 : vector<16x128xf32> to vector<16x128xbf16>
    %c0_29 = arith.constant 0 : index
    %c0_30 = arith.constant 0 : index
    %c0_31 = arith.constant 0 : index
    %43 = vector.load %arg11[%c0_29, %c0_30, %c0_31] : memref<1x128x32xbf16, #tpu.memory_space<vmem>>, vector<1x128x32xbf16>
    %44 = vector.shape_cast %43 : vector<1x128x32xbf16> to vector<128x32xbf16>
    %cst_32 = arith.constant dense<0.000000e+00> : vector<16x32xf32>
    %45 = tpu.matmul %42, %44, %cst_32 {dimension_numbers = #tpu.dot_dimension_numbers<[1], [0], [0], [1], [0, 0, 1, 1], [], []>} : vector<16x128xbf16>, vector<128x32xbf16>, vector<16x32xf32> -> vector<16x32xf32>
    %c0_33 = arith.constant 0 : index
    %c0_34 = arith.constant 0 : index
    %c0_35 = arith.constant 0 : index
    %46 = vector.load %arg12[%c0_33, %c0_34, %c0_35] : memref<1x1x32xbf16, #tpu.memory_space<vmem>>, vector<1x1x32xbf16>
    %47 = vector.shape_cast %46 : vector<1x1x32xbf16> to vector<1x32xbf16>
    %48 = arith.extf %47 : vector<1x32xbf16> to vector<1x32xf32>
    %49 = vector.broadcast %48 : vector<1x32xf32> to vector<16x32xf32>
    %50 = arith.addf %45, %49 : vector<16x32xf32>
    %51 = arith.truncf %50 : vector<16x32xf32> to vector<16x32xbf16>
    %c0_36 = arith.constant 0 : index
    %c0_37 = arith.constant 0 : index
    %52 = vector.load %arg13[%c0_36, %c0_37] : memref<16x32xbf16, #tpu.memory_space<vmem>>, vector<16x32xbf16>
    tpu.vector_store %arg13[%c0_36, %c0_37], %51 {strides = array<i32>} : memref<16x32xbf16, #tpu.memory_space<vmem>>, vector<16x32xbf16>,
    return
  }
  func.func @transform_0(%arg0: i32, %arg1: memref<8xi32, #tpu.memory_space<smem>>) -> (i32, i32) {
    %c0_i32 = arith.constant 0 : i32
    %c0_i32_0 = arith.constant 0 : i32
    return %arg0, %c0_i32 : i32, i32
  }
  func.func @transform_1(%arg0: i32, %arg1: memref<8xi32, #tpu.memory_space<smem>>) -> (i32, i32, i32) {
    %0 = arith.index_cast %arg0 : i32 to index
    %1 = memref.load %arg1[%0] : memref<8xi32, #tpu.memory_space<smem>>
    %c0_i32 = arith.constant 0 : i32
    %c0_i32_0 = arith.constant 0 : i32
    %c0_i32_1 = arith.constant 0 : i32
    return %1, %c0_i32, %c0_i32_0 : i32, i32, i32
  }
  func.func @transform_2(%arg0: i32, %arg1: memref<8xi32, #tpu.memory_space<smem>>) -> (i32, i32, i32) {
    %0 = arith.index_cast %arg0 : i32 to index
    %1 = memref.load %arg1[%0] : memref<8xi32, #tpu.memory_space<smem>>
    %c0_i32 = arith.constant 0 : i32
    %c0_i32_0 = arith.constant 0 : i32
    %c0_i32_1 = arith.constant 0 : i32
    return %1, %c0_i32, %c0_i32_0 : i32, i32, i32
  }
  func.func @transform_3(%arg0: i32, %arg1: memref<8xi32, #tpu.memory_space<smem>>) -> (i32, i32, i32) {
    %0 = arith.index_cast %arg0 : i32 to index
    %1 = memref.load %arg1[%0] : memref<8xi32, #tpu.memory_space<smem>>
    %c0_i32 = arith.constant 0 : i32
    %c0_i32_0 = arith.constant 0 : i32
    %c0_i32_1 = arith.constant 0 : i32
    return %1, %c0_i32, %c0_i32_0 : i32, i32, i32
  }
  func.func @transform_4(%arg0: i32, %arg1: memref<8xi32, #tpu.memory_space<smem>>) -> (i32, i32, i32) {
    %0 = arith.index_cast %arg0 : i32 to index
    %1 = memref.load %arg1[%0] : memref<8xi32, #tpu.memory_space<smem>>
    %c0_i32 = arith.constant 0 : i32
    %c0_i32_0 = arith.constant 0 : i32
    %c0_i32_1 = arith.constant 0 : i32
    return %1, %c0_i32, %c0_i32_0 : i32, i32, i32
  }
  func.func @transform_5(%arg0: i32, %arg1: memref<8xi32, #tpu.memory_space<smem>>) -> (i32, i32, i32) {
    %0 = arith.index_cast %arg0 : i32 to index
    %1 = memref.load %arg1[%0] : memref<8xi32, #tpu.memory_space<smem>>
    %c0_i32 = arith.constant 0 : i32
    %c0_i32_0 = arith.constant 0 : i32
    %c0_i32_1 = arith.constant 0 : i32
    return %1, %c0_i32, %c0_i32_0 : i32, i32, i32
  }
  func.func @transform_6(%arg0: i32, %arg1: memref<8xi32, #tpu.memory_space<smem>>) -> (i32, i32, i32) {
    %0 = arith.index_cast %arg0 : i32 to index
    %1 = memref.load %arg1[%0] : memref<8xi32, #tpu.memory_space<smem>>
    %c0_i32 = arith.constant 0 : i32
    %c0_i32_0 = arith.constant 0 : i32
    %c0_i32_1 = arith.constant 0 : i32
    return %1, %c0_i32, %c0_i32_0 : i32, i32, i32
  }
  func.func @transform_7(%arg0: i32, %arg1: memref<8xi32, #tpu.memory_space<smem>>) -> (i32, i32, i32) {
    %0 = arith.index_cast %arg0 : i32 to index
    %1 = memref.load %arg1[%0] : memref<8xi32, #tpu.memory_space<smem>>
    %c0_i32 = arith.constant 0 : i32
    %c0_i32_0 = arith.constant 0 : i32
    %c0_i32_1 = arith.constant 0 : i32
    return %1, %c0_i32, %c0_i32_0 : i32, i32, i32
  }
  func.func @transform_8(%arg0: i32, %arg1: memref<8xi32, #tpu.memory_space<smem>>) -> (i32, i32, i32) {
    %0 = arith.index_cast %arg0 : i32 to index
    %1 = memref.load %arg1[%0] : memref<8xi32, #tpu.memory_space<smem>>
    %c0_i32 = arith.constant 0 : i32
    %c0_i32_0 = arith.constant 0 : i32
    %c0_i32_1 = arith.constant 0 : i32
    return %1, %c0_i32, %c0_i32_0 : i32, i32, i32
  }
  func.func @transform_9(%arg0: i32, %arg1: memref<8xi32, #tpu.memory_space<smem>>) -> (i32, i32, i32) {
    %0 = arith.index_cast %arg0 : i32 to index
    %1 = memref.load %arg1[%0] : memref<8xi32, #tpu.memory_space<smem>>
    %c0_i32 = arith.constant 0 : i32
    %c0_i32_0 = arith.constant 0 : i32
    %c0_i32_1 = arith.constant 0 : i32
    return %1, %c0_i32, %c0_i32_0 : i32, i32, i32
  }
  func.func @transform_10(%arg0: i32, %arg1: memref<8xi32, #tpu.memory_space<smem>>) -> (i32, i32, i32) {
    %0 = arith.index_cast %arg0 : i32 to index
    %1 = memref.load %arg1[%0] : memref<8xi32, #tpu.memory_space<smem>>
    %c0_i32 = arith.constant 0 : i32
    %c0_i32_0 = arith.constant 0 : i32
    %c0_i32_1 = arith.constant 0 : i32
    return %1, %c0_i32, %c0_i32_0 : i32, i32, i32
  }
  func.func @transform_11(%arg0: i32, %arg1: memref<8xi32, #tpu.memory_space<smem>>) -> (i32, i32) {
    %c0_i32 = arith.constant 0 : i32
    %c0_i32_0 = arith.constant 0 : i32
    return %arg0, %c0_i32 : i32, i32
  }
}

</mosaic_0001>

<bundles_post_ra>
// kernel: custom-call
= control target key start
LH: loop header
LB: loop body
LE: loop exit
PB: predicated region body
PF: predicated region fallthrough
CT: control target
= control target key end

     0   :  { %s6_s0 = inlined_call_operand.vmem [shape: u32[8], index: 0, kind: output, shape index: {}]  }

// kernel: moe_forward.2
= control target key start
LH: loop header
LB: loop body
LE: loop exit
PB: predicated region body
PF: predicated region fallthrough
CT: control target
= control target key end

     0   :  { %vm75_vm0 = vcmask 261120   ;;  %v49_v12 = vlaneseq  ;;  %vm171_vm1 = vcmask 523264   ;;  %vm536_vm2 = vcmask 31744   ;;  %s863_s1 = inlined_call_operand.vmem [shape: bf16[32,64], index: 1, kind: input, shape index: {}]   ;;  %s864_s0 = inlined_call_operand.vmem [shape: bf16[32,32], index: 0, kind: input, shape index: {}]   ;;  %s865_s3 = inlined_call_operand.vmem [shape: bf16[64,64], index: 3, kind: input, shape index: {}]   ;;  %s866_s5 = inlined_call_operand.vmem [shape: bf16[64,64], index: 5, kind: input, shape index: {}]   ;;  %s867_s2 = inlined_call_operand.vmem [shape: bf16[1,64], index: 2, kind: input, shape index: {}]   ;;  %s868_s7 = inlined_call_operand.vmem [shape: bf16[64,64], index: 7, kind: input, shape index: {}]   ;;  %s869_s9 = inlined_call_operand.vmem [shape: bf16[64,4], index: 9, kind: input, shape index: {}]   ;;  %s870_s4 = inlined_call_operand.vmem [shape: bf16[1,64], index: 4, kind: input, shape index: {}]   ;;  %s871_s6 = inlined_call_operand.vmem [shape: bf16[1,64], index: 6, kind: input, shape index: {}]   ;;  %s872_s8 = inlined_call_operand.vmem [shape: bf16[1,64], index: 8, kind: input, shape index: {}]   ;;  %s873_s10 = inlined_call_operand.vmem [shape: bf16[1,4], index: 10, kind: input, shape index: {}]   ;;  %s874_s11 = inlined_call_operand.vmem [shape: f32[32,4], index: 11, kind: output, shape index: {}]  }
   0x1   :  { %v663_v0 = vld [vmem:[%s863_s1] sm:$0xff]   ;;  %v664_v1 = vld [vmem:[%s863_s1 + $0x8] sm:$0xff]   ;;  %v671_v8 = vld [vmem:[%s865_s3 + $0x10] sm:$0xff]  }
   0x2   :  { %607 = vmatprep.subr.bf16.mxu0 %v663_v0  ;;  %v665_v2 = vld [vmem:[%s864_s0] sm:$0xff]   ;;  %v666_v3 = vld [vmem:[%s864_s0 + $0x8] sm:$0xff]   ;;  %v672_v9 = vld [vmem:[%s866_s5 + $0x10] sm:$0xff]   ;;  %v50_v13 = vshrl.u32 %v49_v12, 7 }
   0x3   :  { %608 = vmatpush3.bf16.msra.mxu0 %v663_v0  ;;  %611 = vmatprep.mubr.msk.bf16.mxu0 %vm75_vm0, %v665_v2  ;;  %v667_v4 = vld [vmem:[%s865_s3] sm:$0xff]   ;;  %v669_v6 = vld [vmem:[%s865_s3 + $0x8] sm:$0xff]   ;;  %v673_v10 = vld [vmem:[%s865_s3 + $0x18] sm:$0xff]  }
   0x4   :  { %609 = vmatprep.subr.bf16.mxu0 %v664_v1  ;;  %v668_v5 = vld [vmem:[%s866_s5] sm:$0xff]   ;;  %615 = vmatprep.subr.bf16.mxu1 %v667_v4  ;;  %v670_v7 = vld [vmem:[%s866_s5 + $0x8] sm:$0xff]   ;;  %v674_v11 = vld [vmem:[%s866_s5 + $0x18] sm:$0xff]   ;;  %v800_v16 = vsub.s32 0, %v50_v13 }
   0x5   :  { %616 = vmatpush3.bf16.msra.mxu1 %v667_v4  ;;  %v47_v14 = vld [vmem:[%s867_s2] sm:$0x1]  ;;  %v676_v29 = vld [vmem:[%s868_s7 + $0x8] sm:$0xff]   ;;  %v677_v30 = vld [vmem:[%s868_s7 + $0x10] sm:$0xff]  }
   0x6   :  { %617 = vmatprep.subr.bf16.mxu1 %v669_v6  ;;  %v48_v15 = vunpack.c.l.bf16 %v47_v14  ;;  %v675_v28 = vld [vmem:[%s868_s7] sm:$0xff]   ;;  %v678_v31 = vld [vmem:[%s868_s7 + $0x18] sm:$0xff]   ;;  %v680_v33 = vld [vmem:[%s869_s9 + $0x8] sm:$0xff]  }
   0x7   :  { %610 = vmatpush3.bf16.msra.mxu0 %v664_v1  ;;  %v679_v32 = vld [vmem:[%s869_s9] sm:$0xff]  }
   0x8   :  { %627 = vmatprep.subr.bf16.mxu0 %v668_v5  ;;  %v52_v17 = vrot.slane %v48_v15, %v800_v16  ;;  %v141_v34 = vld [vmem:[%s870_s4] sm:$0x1] }
   0x9   :  { %618 = vmatpush3.bf16.msra.mxu1 %v669_v6  ;;  %v142_v35 = vunpack.c.l.bf16 %v141_v34  ;;  %v235_v59 = vld [vmem:[%s871_s6] sm:$0x1] }
   0xa   :  { %612 = vmatmul.mubr.msk.bf16.vlgmr.msra.gmra.mrb[0].mxu0 %vm75_vm0, %v666_v3  ;;  %619 = vmatprep.subr.bf16.mxu1 %v671_v8  ;;  %v236_v62 = vunpack.c.l.bf16 %v235_v59  ;;  %v451_v34 = vld [vmem:[%s873_s10] sm:$0x1] }
   0xb   :  { %628 = vmatpush3.bf16.msra.mxu0 %v668_v5  ;;  %v146_v36 = vrot.slane %v142_v35, %v800_v16  ;;  %v452_v35 = vunpack.c.l.bf16 %v451_v34 }
   0xc   :  { %629 = vmatprep.subr.bf16.mxu0 %v670_v7  ;;  %v240_v63 = vrot.slane %v236_v62, %v800_v16 }
   0xd   :  { %620 = vmatpush3.bf16.msra.mxu1 %v671_v8 }
   0xe   :  { %621 = vmatprep.subr.bf16.mxu1 %v673_v10 }
   0xf   :  { %630 = vmatpush3.bf16.msra.mxu0 %v670_v7 }
  0x10   :  { %631 = vmatprep.subr.bf16.mxu0 %v672_v9 }
  0x11   :  { %622 = vmatpush3.bf16.msra.mxu1 %v673_v10 }
  0x12   :  { %639 = vmatprep.subr.bf16.mxu1 %v675_v28 }
  0x13   :  { %632 = vmatpush3.bf16.msra.mxu0 %v672_v9 }
  0x14   :  { %633 = vmatprep.subr.bf16.mxu0 %v674_v11 }
  0x17   :  { %634 = vmatpush3.bf16.msra.mxu0 %v674_v11 }
  0x18   :  { %651 = vmatprep.subr.bf16.mxu0 %v679_v32 }
  0xdd   :  { %v613_v18 = vpop.f32.mrb[0].mxu0 }
  0xde   :  { %v116_v19 = vpop.f32.mrb[1].mxu0  ;;  %v125_v21 = vadd.f32 %v613_v18, %v52_v17 }
  0xdf   :  { %v614_v20 = vpop.f32.mrb[2].mxu0  ;;  %v117_v24 = vadd.f32 %v116_v19, %v52_v17  ;;  %v681_v19 = vld [vmem:[%s869_s9 + $0x10] sm:$0xff]  }
  0xe0   :  { %v128_v22 = vadd.f32 %v614_v20, %v52_v17  ;;  %v119_v23 = vpop.f32.mrb[3].mxu0  ;;  %v682_v20 = vld [vmem:[%s869_s9 + $0x18] sm:$0xff]  }
  0xe1   :  { %v120_v25 = vadd.f32 %v119_v23, %v52_v17 }
  0xe2   :  { %v132_v26 = vpack.c.bf16 %v128_v22, %v125_v21  ;;  %v356_v21 = vld [vmem:[%s872_s8] sm:$0x1] }
  0xe3   :  { %v131_v27 = vpack.c.bf16 %v120_v25, %v117_v24  ;;  %v357_v22 = vunpack.c.l.bf16 %v356_v21 }
  0xe5   :  { %623 = vmatprep.mubr.msk.bf16.mxu1 %vm171_vm1, %v131_v27  ;;  %635 = vmatprep.mubr.msk.bf16.mxu0 %vm171_vm1, %v131_v27  ;;  %v361_v23 = vrot.slane %v357_v22, %v800_v16 }
  0xe6   :  { %624 = vmatmul.mubr.msk.bf16.vlgmr.msra.gmra.mrb[0].mxu1 %vm171_vm1, %v132_v26  ;;  %636 = vmatmul.mubr.msk.bf16.vlgmr.msra.gmra.mrb[4].mxu0 %vm171_vm1, %v132_v26 }
  0xe7   :  { %640 = vmatpush3.bf16.msra.mxu1 %v675_v28  ;;  %652 = vmatpush3.bf16.msra.mxu0 %v679_v32 }
  0xe8   :  { %641 = vmatprep.subr.bf16.mxu1 %v676_v29  ;;  %653 = vmatprep.subr.bf16.mxu0 %v680_v33 }
  0xeb   :  { %642 = vmatpush3.bf16.msra.mxu1 %v676_v29  ;;  %654 = vmatpush3.bf16.msra.mxu0 %v680_v33 }
  0xec   :  { %643 = vmatprep.subr.bf16.mxu1 %v677_v30  ;;  %655 = vmatprep.subr.bf16.mxu0 %v681_v19 }
  0xef   :  { %644 = vmatpush3.bf16.msra.mxu1 %v677_v30  ;;  %656 = vmatpush3.bf16.msra.mxu0 %v681_v19 }
  0xf0   :  { %645 = vmatprep.subr.bf16.mxu1 %v678_v31  ;;  %657 = vmatprep.subr.bf16.mxu0 %v682_v20 }
  0xf3   :  { %646 = vmatpush3.bf16.msra.mxu1 %v678_v31  ;;  %658 = vmatpush3.bf16.msra.mxu0 %v682_v20 }
 0x1b9   :  { %v625_v37 = vpop.f32.mrb[0].mxu1  ;;  %v637_v38 = vpop.f32.mrb[4].mxu0 }
 0x1ba   :  { %v221_v39 = vadd.f32 %v625_v37, %v146_v36  ;;  %v212_v40 = vpop.f32.mrb[1].mxu1  ;;  %v299_v41 = vpop.f32.mrb[5].mxu0  ;;  %v308_v3 = vadd.f32 %v637_v38, %v240_v63 }
 0x1bb   :  { %v213_v42 = vadd.f32 %v212_v40, %v146_v36  ;;  %v626_v43 = vpop.f32.mrb[2].mxu1  ;;  %v638_v44 = vpop.f32.mrb[6].mxu0  ;;  %v300_v6 = vadd.f32 %v299_v41, %v240_v63 }
 0x1bc   :  { %v565_v45 = vmul.f32 -1.442695, %v221_v39  ;;  %v224_v46 = vadd.f32 %v626_v43, %v146_v36  ;;  %v215_v47 = vpop.f32.mrb[3].mxu1  ;;  %v302_v48 = vpop.f32.mrb[7].mxu0  ;;  %v311_v10 = vadd.f32 %v638_v44, %v240_v63 }
 0x1bd   :  { %v563_v49 = vmul.f32 -1.442695, %v213_v42  ;;  %v216_v50 = vadd.f32 %v215_v47, %v146_v36  ;;  %v303_v13 = vadd.f32 %v302_v48, %v240_v63  ;;  %v456_v36 = vrot.slane %v452_v35, %v800_v16 }
 0x1be   :  { %683 = vpow2.f32 %v565_v45  ;;  %v566_v51 = vmul.f32 -1.442695, %v224_v46 }
 0x1bf   :  { %685 = vpow2.f32 %v563_v49  ;;  %v564_v52 = vmul.f32 -1.442695, %v216_v50 }
 0x1c0   :  { %687 = vpow2.f32 %v566_v51 }
 0x1c1   :  { %689 = vpow2.f32 %v564_v52 }
 0x1c8   :  { %v684_v53 = vpop.eup %683 }
 0x1c9   :  { %v686_v54 = vpop.eup %685  ;;  %v328_v55 = vadd.f32 1.0, %v684_v53 }
 0x1ca   :  { %v688_v56 = vpop.eup %687  ;;  %v326_v57 = vadd.f32 1.0, %v686_v54 }
 0x1cb   :  { %v690_v58 = vpop.eup %689  ;;  %691 = vrcp.f32 %v328_v55  ;;  %v329_v60 = vadd.f32 1.0, %v688_v56 }
 0x1cc   :  { %693 = vrcp.f32 %v326_v57  ;;  %v327_v61 = vadd.f32 1.0, %v690_v58 }
 0x1cd   :  { %695 = vrcp.f32 %v329_v60 }
 0x1ce   :  { %697 = vrcp.f32 %v327_v61 }
 0x1d5   :  { %v692_v0 = vpop.eup %691 }
 0x1d6   :  { %v694_v1 = vpop.eup %693  ;;  %v340_v2 = vmul.f32 %v692_v0, %v221_v39 }
 0x1d7   :  { %v696_v4 = vpop.eup %695  ;;  %v338_v5 = vmul.f32 %v694_v1, %v213_v42 }
 0x1d8   :  { %v698_v7 = vpop.eup %697  ;;  %v344_v8 = vmul.f32 %v340_v2, %v308_v3  ;;  %v341_v9 = vmul.f32 %v696_v4, %v224_v46 }
 0x1d9   :  { %v342_v11 = vmul.f32 %v338_v5, %v300_v6  ;;  %v339_v12 = vmul.f32 %v698_v7, %v216_v50 }
 0x1da   :  { %v345_v14 = vmul.f32 %v341_v9, %v311_v10 }
 0x1db   :  { %v343_v15 = vmul.f32 %v339_v12, %v303_v13 }
 0x1dc   :  { %v347_v17 = vpack.c.bf16 %v345_v14, %v344_v8 }
 0x1dd   :  { %v346_v18 = vpack.c.bf16 %v343_v15, %v342_v11 }
 0x1df   :  { %647 = vmatprep.mubr.msk.bf16.mxu1 %vm171_vm1, %v346_v18 }
 0x1e0   :  { %648 = vmatmul.mubr.msk.bf16.vlgmr.msra.gmra.mrb[4].mxu1 %vm171_vm1, %v347_v17 }
 0x2b3   :  { %v649_v24 = vpop.f32.mrb[4].mxu1 }
 0x2b4   :  { %v426_v25 = vpop.f32.mrb[5].mxu1  ;;  %v435_v27 = vadd.f32 %v649_v24, %v361_v23 }
 0x2b5   :  { %v650_v26 = vpop.f32.mrb[6].mxu1  ;;  %v427_v30 = vadd.f32 %v426_v25, %v361_v23 }
 0x2b6   :  { %v438_v28 = vadd.f32 %v650_v26, %v361_v23  ;;  %v429_v29 = vpop.f32.mrb[7].mxu1 }
 0x2b7   :  { %v430_v31 = vadd.f32 %v429_v29, %v361_v23 }
 0x2b8   :  { %v442_v32 = vpack.c.bf16 %v438_v28, %v435_v27 }
 0x2b9   :  { %v441_v33 = vpack.c.bf16 %v430_v31, %v427_v30 }
 0x2bb   :  { %659 = vmatprep.mubr.msk.bf16.mxu0 %vm171_vm1, %v441_v33 }
 0x2bc   :  { %660 = vmatmul.mubr.msk.bf16.vlgmr.msra.gmra.mrb[8].mxu0 %vm171_vm1, %v442_v32 }
 0x38f   :  { %v661_v37 = vpop.f32.mrb[8].mxu0 }
 0x390   :  { %v530_v38 = vadd.f32 %v661_v37, %v456_v36  ;;  %v521_v39 = vpop.f32.mrb[9].mxu0 }
 0x391   :  { %v522_v40 = vadd.f32 %v521_v39, %v456_v36  ;;  %v662_v41 = vpop.f32.mrb[10].mxu0 }
 0x392   :  { %539 = vst.msk [vmem:[%s874_s11 + $0x10] sm:$0xff] %vm536_vm2, %v530_v38  ;;  %v533_v42 = vadd.f32 %v662_v41, %v456_v36  ;;  %v524_v43 = vpop.f32.mrb[11].mxu0 }
 0x393   :  { %537 = vst.msk [vmem:[%s874_s11] sm:$0xff] %vm536_vm2, %v522_v40  ;;  %v525_v44 = vadd.f32 %v524_v43, %v456_v36 }
 0x394   :  { %540 = vst.msk [vmem:[%s874_s11 + $0x18] sm:$0xff] %vm536_vm2, %v533_v42 }
 0x395   :  { %538 = vst.msk [vmem:[%s874_s11 + $0x8] sm:$0xff] %vm536_vm2, %v525_v44 }

// kernel: moe_forward.3
= control target key start
LH: loop header
LB: loop body
LE: loop exit
PB: predicated region body
PF: predicated region fallthrough
CT: control target
= control target key end

     0   :  { %s1837_s0 = inlined_call_operand.vmem [shape: s32[8], index: 0, kind: input, shape index: {}]   ;;  %s1838_s1 = inlined_call_operand.vmem [shape: bf16[128,32], index: 1, kind: input, shape index: {}]   ;;  %s1839_s2 = inlined_call_operand.vmem [shape: bf16[4,32,128], index: 2, kind: input, shape index: {}]   ;;  %s1840_s3 = inlined_call_operand.vmem [shape: bf16[4,1,128], index: 3, kind: input, shape index: {}]   ;;  %s1841_s4 = inlined_call_operand.vmem [shape: bf16[4,128,128], index: 4, kind: input, shape index: {}]   ;;  %s1842_s5 = inlined_call_operand.vmem [shape: bf16[4,1,128], index: 5, kind: input, shape index: {}]   ;;  %s1843_s6 = inlined_call_operand.vmem [shape: bf16[4,128,128], index: 6, kind: input, shape index: {}]   ;;  %s1844_s7 = inlined_call_operand.vmem [shape: bf16[4,1,128], index: 7, kind: input, shape index: {}]   ;;  %s1845_s8 = inlined_call_operand.vmem [shape: bf16[4,128,128], index: 8, kind: input, shape index: {}]   ;;  %s1846_s9 = inlined_call_operand.vmem [shape: bf16[4,1,128], index: 9, kind: input, shape index: {}]   ;;  %s1847_s10 = inlined_call_operand.vmem [shape: bf16[4,128,32], index: 10, kind: input, shape index: {}]   ;;  %s1848_s11 = inlined_call_operand.vmem [shape: bf16[4,1,32], index: 11, kind: input, shape index: {}]   ;;  %s1849_s12 = inlined_call_operand.vmem [shape: bf16[128,32], index: 12, kind: output, shape index: {}]  }
   0x1   :  { %s17_s23 = sshll.u32 %s1837_s0, 4  ;;  %s18_s23 = int_to_ptr.vmem [resolvable:$true] %s17_s23 }
   0x2   :  { %s1596_s24 = scalar_lea.vmem %s18_s23, 16  ;;  %p1601_p1 = scmp.lt.s32.totalorder %s18_s23, %s18_s23 }
   0x3   :  { %p1597_p0 = scmp.ne.s32.totalorder %s18_s23, %s1596_s24  ;;  %p1602_p2 = scmp.lt.s32.totalorder %s1596_s24, %s1596_s24 }
   0x5   :  { %p1603_p3 = por %p1602_p2, %p1601_p1 }
   0x7   :  { %p1604_p4 = pnand %p1603_p3, %p1597_p0 }
   0x9   :  { %1607 = shalt.err (!%p1604_p4)  }
   0xa   :  { %s1618_s25 = smov [#allocation3]  }
   0xb   :  { %20 = dma.vmem_to_smem %s18_s23, 16, %s1618_s25, [#allocation2] }
   0xc   :  { %1612 = dma.done.wait [#allocation2], 16 }
   0xd   :  { %1613 = vsyncadd [#allocation2], 4294967280 }
   0xe   :  { %22 = sfence }
   0xf   :  { %s1689_s26 = smov 0  }
  0x10 LB: > { %s1695_s0 = sadd.s32 4294967295, %s1616_s26   ;;  %p1351_p5 = scmp.ge.s32.totalorder %s1616_s26, 1  ;;  %s1616_s26 = sphi %s1689_s26, %s28_s26  }
  0x11   : > { %p475_p6 = scmp.lt.s32.totalorder %s1616_s26, 9 }
  0x13   : > { %p476_p7 = pnand %p1351_p5, %p475_p6 }
  0x14   : > { %s571_s27 = sld [smem:[#allocation3 + %s1695_s0]] (!%p476_p7)  ;;  %s1352_s28 = sshll.u32 (!%p476_p7), %s1695_s0, 1  ;;  %v1619_v0 = vmov (!%p476_p7), 0.0   ;;  %vm1620_vm0 = vmmov (!%p476_p7), 0   ;;  %vm667_vm1 = vcmask (!%p476_p7), 261120   ;;  %v646_v20 = vlaneseq (!%p476_p7) }
  0x15   : > { %479 = sbr.rel (%p476_p7) target bundleno = 944 (0x3b0), region = 64  ;;  %1454 = vmatprep.subr.bf16.mxu0 (!%p476_p7), %v1619_v0  ;;  %1458 = vmatprep.mubr.msk.bf16.mxu0 (!%p476_p7), %vm1620_vm0, %v1619_v0  ;;  %p566_p8 = scmp.lt.s32.totalorder (!%p476_p7), %s1352_s28, 15  ;;  %vm1183_vm2 = vcmask (!%p476_p7), 257024  }
  0x16   : > { %s583_s29 = sld [smem:[#allocation3 + %s1695_s0]] (!%p476_p7)  ;;  %1462 = vmatprep.subr.bf16.mxu1 (!%p476_p7), %v1619_v0  ;;  %1478 = vmatprep.mubr.msk.bf16.mxu1 (!%p476_p7), %vm1620_vm0, %v1619_v0  ;;  %v647_v21 = vshrl.u32 (!%p476_p7), %v646_v20, 7 }
  0x17   : > { %s595_s30 = sld [smem:[#allocation3 + %s1695_s0]] (!%p476_p7) }
  0x18   : > { %v1770_v24 = vsub.s32 (!%p476_p7), 0, %v647_v21  ;;  %s607_s18 = sld [smem:[#allocation3 + %s1695_s0]] (!%p476_p7) }
  0x19   : > { %s619_s23 = sld [smem:[#allocation3 + %s1695_s0]] (!%p476_p7) }
  0x1a   : > { %p572_p9 = scmp.lt.s32.totalorder (!%p476_p7), %s571_s27, 3 }
  0x1c   : > { %s1851_s28 = smov (!%p566_p8, %s1352_s28), 15  ;;  %p584_p10 = scmp.lt.s32.totalorder %s583_s29, 3 }
  0x1d   : > { %s1353_s13 = sshll.u32 %s1851_s28, 2  ;;  %s1853_s27 = smov (!%p572_p9, %s571_s27), 3 }
  0x1e   : > { %s569_s16 = scalar_lea.vmem %s1838_s1, %s1353_s13  ;;  %s1855_s29 = smov (!%p584_p10, %s583_s29), 3 }
  0x1f   : > { %s1408_s17 = sshll.u32 %s1853_s27, 4  ;;  %p596_p11 = scmp.lt.s32.totalorder %s595_s30, 3  ;;  %v1555_v5 = vld [vmem:[%s569_s16] sm:$0xff]  }
  0x20   : > { %s576_s20 = scalar_lea.vmem %s1839_s2, %s1408_s17  ;;  %s1409_s21 = sshll.u32 %s1855_s29, 6 }
  0x21   : > { %v1553_v1 = vld [vmem:[%s576_s20] sm:$0xff]   ;;  %s1723_s24 = scalar_lea.vmem %s1841_s4, %s1409_s21  ;;  %v1554_v2 = vld [vmem:[%s576_s20 + $0x8] sm:$0xff]   ;;  %s1857_s30 = smov (!%p596_p11, %s595_s30), 3 }
  0x22   : > { %1455 = vmatpush3.bf16.msra.mxu0 %v1553_v1  ;;  %v1556_v3 = vld [vmem:[%s1723_s24] sm:$0xff]   ;;  %s1410_s25 = sshll.u32 %s1857_s30, 6  ;;  %v1558_v4 = vld [vmem:[%s1723_s24 + $0x8] sm:$0xff]   ;;  %v1560_v7 = vld [vmem:[%s1723_s24 + $0x10] sm:$0xff]   ;;  %s578_s30 = sld [smem:[#allocation3 + %s1695_s0]] }
  0x23   : > { %1456 = vmatprep.subr.bf16.mxu0 %v1619_v0  ;;  %1463 = vmatpush3.bf16.msra.mxu1 %v1556_v3  ;;  %s1730_s29 = scalar_lea.vmem %s1843_s6, %s1410_s25  ;;  %v1562_v9 = vld [vmem:[%s1723_s24 + $0x18] sm:$0xff]   ;;  %v1564_v11 = vld [vmem:[%s1723_s24 + $0x20] sm:$0xff]   ;;  %v1566_v13 = vld [vmem:[%s1723_s24 + $0x28] sm:$0xff]   ;;  %p608_p13 = scmp.lt.s32.totalorder %s607_s18, 3 }
  0x24   : > { %1464 = vmatprep.subr.bf16.mxu1 %v1619_v0  ;;  %v1557_v6 = vld [vmem:[%s1730_s29] sm:$0xff]   ;;  %v1559_v8 = vld [vmem:[%s1730_s29 + $0x8] sm:$0xff]   ;;  %v1561_v10 = vld [vmem:[%s1730_s29 + $0x10] sm:$0xff]   ;;  %p620_p0 = scmp.lt.s32.totalorder %s619_s23, 3  ;;  %s614_s21 = sld [smem:[#allocation3 + %s1695_s0]] }
  0x25   : > { %v1563_v12 = vld [vmem:[%s1730_s29 + $0x18] sm:$0xff]   ;;  %v1565_v14 = vld [vmem:[%s1730_s29 + $0x20] sm:$0xff]   ;;  %v1567_v15 = vld [vmem:[%s1730_s29 + $0x28] sm:$0xff]   ;;  %s1861_s18 = smov (!%p608_p13, %s607_s18), 3  ;;  %s626_s25 = sld [smem:[#allocation3 + %s1695_s0]] }
  0x26   : > { %1457 = vmatpush3.bf16.msra.mxu0 %v1554_v2  ;;  %v1568_v16 = vld [vmem:[%s1723_s24 + $0x30] sm:$0xff]   ;;  %v1570_v18 = vld [vmem:[%s1723_s24 + $0x38] sm:$0xff]   ;;  %s1411_s19 = sshll.u32 %s1861_s18, 6  ;;  %s1863_s23 = smov (!%p620_p0, %s619_s23), 3 }
  0x27   : > { %1482 = vmatprep.subr.bf16.mxu0 %v1619_v0  ;;  %1465 = vmatpush3.bf16.msra.mxu1 %v1558_v4  ;;  %v1569_v17 = vld [vmem:[%s1730_s29 + $0x30] sm:$0xff]   ;;  %v1571_v19 = vld [vmem:[%s1730_s29 + $0x38] sm:$0xff]   ;;  %s612_s22 = scalar_lea.vmem %s1845_s8, %s1411_s19  ;;  %s1412_s24 = sshll.u32 %s1863_s23, 6 }
  0x28   : > { %1466 = vmatprep.subr.bf16.mxu1 %v1619_v0  ;;  %p579_p12 = scmp.lt.s32.totalorder %s578_s30, 3  ;;  %v1572_v33 = vld [vmem:[%s612_s22] sm:$0xff]   ;;  %v1573_v34 = vld [vmem:[%s612_s22 + $0x8] sm:$0xff]   ;;  %v1574_v35 = vld [vmem:[%s612_s22 + $0x10] sm:$0xff]   ;;  %s1792_s14 = scalar_lea.vmem %s1847_s10, %s1412_s24 }
  0x29   : > { %1459 = vmatmul.mubr.msk.bf16.vlgmr.msra.gmra.mrb[0].mxu0 %vm667_vm1, %v1555_v5  ;;  %v1575_v36 = vld [vmem:[%s612_s22 + $0x18] sm:$0xff]   ;;  %v1576_v37 = vld [vmem:[%s612_s22 + $0x20] sm:$0xff]   ;;  %v1577_v38 = vld [vmem:[%s612_s22 + $0x28] sm:$0xff]   ;;  %s590_s29 = sld [smem:[#allocation3 + %s1695_s0]] }
  0x2a   : > { %1483 = vmatpush3.bf16.msra.mxu0 %v1557_v6  ;;  %1498 = vmatprep.mubr.msk.bf16.mxu0 %vm1620_vm0, %v1619_v0  ;;  %s1859_s30 = smov (!%p579_p12, %s578_s30), 3  ;;  %v1578_v39 = vld [vmem:[%s612_s22 + $0x30] sm:$0xff]   ;;  %v1579_v40 = vld [vmem:[%s612_s22 + $0x38] sm:$0xff]   ;;  %v1580_v41 = vld [vmem:[%s1792_s14] sm:$0xff]   ;;  %p615_p3 = scmp.lt.s32.totalorder %s614_s21, 3 }
  0x2b   : > { %1484 = vmatprep.subr.bf16.mxu0 %v1619_v0  ;;  %1467 = vmatpush3.bf16.msra.mxu1 %v1560_v7  ;;  %s581_s17 = scalar_lea.vmem %s1840_s3, %s1859_s30  ;;  %v1581_v42 = vld [vmem:[%s1792_s14 + $0x8] sm:$0xff]   ;;  %v1582_v43 = vld [vmem:[%s1792_s14 + $0x10] sm:$0xff]   ;;  %v1583_v44 = vld [vmem:[%s1792_s14 + $0x18] sm:$0xff]   ;;  %p627_p4 = scmp.lt.s32.totalorder %s626_s25, 3 }
  0x2c   : > { %1468 = vmatprep.subr.bf16.mxu1 %v1619_v0  ;;  %v644_v22 = vld [vmem:[%s581_s17] sm:$0x1]  ;;  %v1585_v46 = vld [vmem:[%s1792_s14 + $0x28] sm:$0xff]   ;;  %s602_s17 = sld [smem:[#allocation3 + %s1695_s0]]  ;;  %s1869_s21 = smov (!%p615_p3, %s614_s21), 3 }
  0x2d   : > { %v645_v23 = vunpack.c.l.bf16 %v644_v22  ;;  %v1584_v45 = vld [vmem:[%s1792_s14 + $0x20] sm:$0xff]   ;;  %s617_s24 = scalar_lea.vmem %s1846_s9, %s1869_s21  ;;  %s1871_s25 = smov (!%p627_p4, %s626_s25), 3 }
  0x2e   : > { %1485 = vmatpush3.bf16.msra.mxu0 %v1559_v8 }
  0x2f   : > { %1486 = vmatprep.subr.bf16.mxu0 %v1619_v0  ;;  %1469 = vmatpush3.bf16.msra.mxu1 %v1562_v9  ;;  %v649_v25 = vrot.slane %v645_v23, %v1770_v24  ;;  %p591_p1 = scmp.lt.s32.totalorder %s590_s29, 3 }
  0x30   : > { %1470 = vmatprep.subr.bf16.mxu1 %v1619_v0 }
  0x31   : > { %s1865_s29 = smov (!%p591_p1, %s590_s29), 3 }
  0x32   : > { %1487 = vmatpush3.bf16.msra.mxu0 %v1561_v10  ;;  %s593_s16 = scalar_lea.vmem %s1842_s5, %s1865_s29  ;;  %p603_p2 = scmp.lt.s32.totalorder %s602_s17, 3 }
  0x33   : > { %1488 = vmatprep.subr.bf16.mxu0 %v1619_v0  ;;  %1471 = vmatpush3.bf16.msra.mxu1 %v1564_v11  ;;  %v729_v47 = vld [vmem:[%s593_s16] sm:$0x1]  ;;  %s629_s29 = scalar_lea.vmem %s1848_s11, %s1871_s25  ;;  %s635_s16 = scalar_lea.vmem %s1849_s12, %s1353_s13 }
  0x34   : > { %1472 = vmatprep.subr.bf16.mxu1 %v1619_v0  ;;  %v730_v48 = vunpack.c.l.bf16 %v729_v47  ;;  %s1867_s17 = smov (!%p603_p2, %s602_s17), 3 }
  0x35   : > { %s605_s20 = scalar_lea.vmem %s1844_s7, %s1867_s17 }
  0x36   : > { %1489 = vmatpush3.bf16.msra.mxu0 %v1563_v12  ;;  %v734_v49 = vrot.slane %v730_v48, %v1770_v24  ;;  %v840_v2 = vld [vmem:[%s605_s20] sm:$0x1] }
  0x37   : > { %1490 = vmatprep.subr.bf16.mxu0 %v1619_v0  ;;  %1473 = vmatpush3.bf16.msra.mxu1 %v1566_v13  ;;  %v841_v4 = vunpack.c.l.bf16 %v840_v2 }
  0x38   : > { %1474 = vmatprep.subr.bf16.mxu1 %v1619_v0 }
  0x39   : > { %v845_v5 = vrot.slane %v841_v4, %v1770_v24 }
  0x3a   : > { %1491 = vmatpush3.bf16.msra.mxu0 %v1565_v14 }
  0x3b   : > { %1492 = vmatprep.subr.bf16.mxu0 %v1619_v0  ;;  %1475 = vmatpush3.bf16.msra.mxu1 %v1568_v16  ;;  %v1587_v16 = vld [vmem:[%s1792_s14 + $0x38] sm:$0xff]  }
  0x3c   : > { %1476 = vmatprep.subr.bf16.mxu1 %v1619_v0 }
  0x3e   : > { %1493 = vmatpush3.bf16.msra.mxu0 %v1567_v15  ;;  %v1586_v15 = vld [vmem:[%s1792_s14 + $0x30] sm:$0xff]  }
  0x3f   : > { %1494 = vmatprep.subr.bf16.mxu0 %v1619_v0  ;;  %1477 = vmatpush3.bf16.msra.mxu1 %v1570_v18 }
  0x40   : > { %1502 = vmatprep.subr.bf16.mxu1 %v1619_v0 }
  0x42   : > { %1495 = vmatpush3.bf16.msra.mxu0 %v1569_v17  ;;  %v968_v17 = vld [vmem:[%s617_s24] sm:$0x1] }
  0x43   : > { %1496 = vmatprep.subr.bf16.mxu0 %v1619_v0  ;;  %v969_v18 = vunpack.c.l.bf16 %v968_v17 }
  0x46   : > { %1497 = vmatpush3.bf16.msra.mxu0 %v1571_v19  ;;  %v973_v19 = vrot.slane %v969_v18, %v1770_v24 }
  0x47   : > { %1522 = vmatprep.subr.bf16.mxu0 %v1619_v0 }
  0xfc   : > { %v705_v26 = vpop.f32.mrb[0].mxu0 }
  0xfd   : > { %v1460_v27 = vpop.f32.mrb[1].mxu0  ;;  %v706_v29 = vadd.f32 %v705_v26, %v649_v25 }
  0xfe   : > { %v708_v28 = vpop.f32.mrb[2].mxu0  ;;  %v1080_v27 = vld [vmem:[%s629_s29] sm:$0x1] }
  0xff   : > { %v709_v30 = vadd.f32 %v708_v28, %v649_v25  ;;  %v1461_v31 = vpop.f32.mrb[3].mxu0  ;;  %v1081_v28 = vunpack.c.l.bf16 %v1080_v27 }
 0x101   : > { %v712_v32 = vpack.c.bf16 %v709_v30, %v706_v29  ;;  %v1085_v29 = vrot.slane %v1081_v28, %v1770_v24 }
 0x103   : > { %1479 = vmatmul.mubr.bf16.vlgmr.msra.gmra.mrb[0].mxu1 %v712_v32  ;;  %1499 = vmatmul.mubr.bf16.vlgmr.msra.gmra.mrb[4].mxu0 %v712_v32 }
 0x104   : > { %1518 = vmatprep.mubr.msk.bf16.mxu1 %vm1620_vm0, %v1619_v0  ;;  %1538 = vmatprep.mubr.msk.bf16.mxu0 %vm1620_vm0, %v1619_v0 }
 0x105   : > { %1503 = vmatpush3.bf16.msra.mxu1 %v1572_v33  ;;  %1523 = vmatpush3.bf16.msra.mxu0 %v1580_v41 }
 0x106   : > { %1504 = vmatprep.subr.bf16.mxu1 %v1619_v0  ;;  %1524 = vmatprep.subr.bf16.mxu0 %v1619_v0 }
 0x109   : > { %1505 = vmatpush3.bf16.msra.mxu1 %v1573_v34  ;;  %1525 = vmatpush3.bf16.msra.mxu0 %v1581_v42 }
 0x10a   : > { %1506 = vmatprep.subr.bf16.mxu1 %v1619_v0  ;;  %1526 = vmatprep.subr.bf16.mxu0 %v1619_v0 }
 0x10d   : > { %1507 = vmatpush3.bf16.msra.mxu1 %v1574_v35  ;;  %1527 = vmatpush3.bf16.msra.mxu0 %v1582_v43 }
 0x10e   : > { %1508 = vmatprep.subr.bf16.mxu1 %v1619_v0  ;;  %1528 = vmatprep.subr.bf16.mxu0 %v1619_v0 }
 0x111   : > { %1509 = vmatpush3.bf16.msra.mxu1 %v1575_v36  ;;  %1529 = vmatpush3.bf16.msra.mxu0 %v1583_v44 }
 0x112   : > { %1510 = vmatprep.subr.bf16.mxu1 %v1619_v0  ;;  %1530 = vmatprep.subr.bf16.mxu0 %v1619_v0 }
 0x115   : > { %1511 = vmatpush3.bf16.msra.mxu1 %v1576_v37  ;;  %1531 = vmatpush3.bf16.msra.mxu0 %v1584_v45 }
 0x116   : > { %1512 = vmatprep.subr.bf16.mxu1 %v1619_v0  ;;  %1532 = vmatprep.subr.bf16.mxu0 %v1619_v0 }
 0x119   : > { %1513 = vmatpush3.bf16.msra.mxu1 %v1577_v38  ;;  %1533 = vmatpush3.bf16.msra.mxu0 %v1585_v46 }
 0x11a   : > { %1514 = vmatprep.subr.bf16.mxu1 %v1619_v0  ;;  %1534 = vmatprep.subr.bf16.mxu0 %v1619_v0 }
 0x11d   : > { %1515 = vmatpush3.bf16.msra.mxu1 %v1578_v39  ;;  %1535 = vmatpush3.bf16.msra.mxu0 %v1586_v15 }
 0x11e   : > { %1516 = vmatprep.subr.bf16.mxu1 %v1619_v0  ;;  %1536 = vmatprep.subr.bf16.mxu0 %v1619_v0 }
 0x121   : > { %1517 = vmatpush3.bf16.msra.mxu1 %v1579_v40  ;;  %1537 = vmatpush3.bf16.msra.mxu0 %v1587_v16 }
 0x1d6   : > { %v817_v50 = vpop.f32.mrb[0].mxu1  ;;  %v928_v51 = vpop.f32.mrb[4].mxu0 }
 0x1d7   : > { %v818_v52 = vadd.f32 %v817_v50, %v734_v49  ;;  %v1480_v53 = vpop.f32.mrb[1].mxu1  ;;  %v1500_v54 = vpop.f32.mrb[5].mxu0  ;;  %v929_v8 = vadd.f32 %v928_v51, %v845_v5 }
 0x1d8   : > { %v820_v55 = vpop.f32.mrb[2].mxu1  ;;  %v931_v56 = vpop.f32.mrb[6].mxu0 }
 0x1d9   : > { %v1386_v57 = vmul.f32 -1.442695, %v818_v52  ;;  %v821_v58 = vadd.f32 %v820_v55, %v734_v49  ;;  %v1481_v59 = vpop.f32.mrb[3].mxu1  ;;  %v1501_v60 = vpop.f32.mrb[7].mxu0  ;;  %v932_v12 = vadd.f32 %v931_v56, %v845_v5 }
 0x1db   : > { %1588 = vpow2.f32 %v1386_v57  ;;  %v1387_v61 = vmul.f32 -1.442695, %v821_v58 }
 0x1dd   : > { %1590 = vpow2.f32 %v1387_v61 }
 0x1e5   : > { %v1589_v62 = vpop.eup %1588 }
 0x1e6   : > { %v941_v63 = vadd.f32 1.0, %v1589_v62 }
 0x1e7   : > { %v1591_v1 = vpop.eup %1590 }
 0x1e8   : > { %1592 = vrcp.f32 %v941_v63  ;;  %v942_v3 = vadd.f32 1.0, %v1591_v1 }
 0x1ea   : > { %1594 = vrcp.f32 %v942_v3 }
 0x1f2   : > { %v1593_v6 = vpop.eup %1592 }
 0x1f3   : > { %v947_v7 = vmul.f32 %v1593_v6, %v818_v52 }
 0x1f4   : > { %v1595_v9 = vpop.eup %1594 }
 0x1f5   : > { %v949_v10 = vmul.f32 %v947_v7, %v929_v8  ;;  %v948_v11 = vmul.f32 %v1595_v9, %v821_v58 }
 0x1f7   : > { %v950_v13 = vmul.f32 %v948_v11, %v932_v12 }
 0x1f9   : > { %v951_v14 = vpack.c.bf16 %v950_v13, %v949_v10 }
 0x1fb   : > { %1519 = vmatmul.mubr.bf16.vlgmr.msra.gmra.mrb[4].mxu1 %v951_v14 }
 0x2ce   : > { %v1056_v20 = vpop.f32.mrb[4].mxu1 }
 0x2cf   : > { %v1520_v21 = vpop.f32.mrb[5].mxu1  ;;  %v1057_v23 = vadd.f32 %v1056_v20, %v973_v19 }
 0x2d0   : > { %v1059_v22 = vpop.f32.mrb[6].mxu1 }
 0x2d1   : > { %v1060_v0 = vadd.f32 %v1059_v22, %v973_v19  ;;  %v1521_v25 = vpop.f32.mrb[7].mxu1 }
 0x2d3   : > { %v1063_v26 = vpack.c.bf16 %v1060_v0, %v1057_v23 }
 0x2d5   : > { %1539 = vmatmul.mubr.bf16.vlgmr.msra.gmra.mrb[8].mxu0 %v1063_v26 }
 0x3a8   : > { %v1168_v30 = vpop.f32.mrb[8].mxu0 }
 0x3a9   : > { %v1169_v31 = vadd.f32 %v1168_v30, %v1085_v29  ;;  %v1540_v32 = vpop.f32.mrb[9].mxu0 }
 0x3aa   : > { %v1171_v33 = vpop.f32.mrb[10].mxu0 }
 0x3ab   : > { %v1413_v34 = vpack.c.bf16 %v1169_v31, %v1169_v31  ;;  %v1172_v35 = vadd.f32 %v1171_v33, %v1085_v29  ;;  %v1541_v36 = vpop.f32.mrb[11].mxu0 }
 0x3ad   : > { %1184 = vst.msk [vmem:[%s635_s16] sm:$0xf] %vm1183_vm2, %v1413_v34  ;;  %v1414_v37 = vpack.c.bf16 %v1172_v35, %v1172_v35 }
 0x3af   : > { %1185 = vst.msk [vmem:[%s635_s16 + $0x4] sm:$0xf] %vm1183_vm2, %v1414_v37 }
 0x3b0 PF: > { %s28_s26 = sadd.s32 1, %s1616_s26  }
 0x3b1   : > { %p25_p5 = scmp.ge.s32.totalorder %s28_s26, 10  }
 0x3b3   :  { %27 = sbr.rel (!%p25_p5) target bundleno = 16 (0x10), region = 124 }

</bundles_post_ra>
